<compile_context>
chip_gen: v5e
topology: v5e:2x2
jax: 0.10.0
libtpu: 0.0.40
codegen_flags: <defaults>
</compile_context>

<pallas_src>
import jax
import jax.numpy as jnp
from jax import lax
from jax.experimental import pallas as pl
from jax.experimental.pallas import tpu as pltpu

# ---- problem sizes (small, deterministic) ----
N, H, W = 2, 8, 8
C_MID = 4                  # out_channel
C_IN = C_MID * 4           # in_channel = out_channel * expansion
C_OUT = C_IN
EPS = 1e-5


# --------------------------- Pallas kernel ---------------------------------
def make_bottleneck_kernel():
    def kernel(x_ref, w1_ref, w2_ref, w3_ref, b1_ref, b2_ref, b3_ref,
               upm_ref, dnm_ref, o_ref):
        # ---- conv1 (1x1) + bn1 + relu: one MXU dot, K = W*C_in -------------
        t = jnp.dot(x_ref[...].astype(w1_ref.dtype), w1_ref[...],
                    preferred_element_type=jnp.float32)          # [rows, W*Cmid]
        t = jnp.maximum(t + b1_ref[...], 0.0)

        # ---- conv2 (3x3, stride 1, pad 1) + bn2 + relu ---------------------
        # dx taps (and left/right zero padding) live inside the block-
        # tridiagonal weight; dy taps are the two row-shifted copies, masked
        # at image boundaries by precomputed per-tile constants.  The whole
        # [rows, 3*W*Cmid] operand stays in registers (no VMEM scratch).
        up = upm_ref[...] * jnp.roll(t, 1, axis=0)      # t[r-1], zero at y == 0
        down = dnm_ref[...] * jnp.roll(t, -1, axis=0)   # t[r+1], zero at y == H-1
        patch = jnp.concatenate([up, t, down], axis=1)
        acc = jnp.dot(patch.astype(w2_ref.dtype), w2_ref[...],
                      preferred_element_type=jnp.float32)        # [rows, W*Cmid]
        acc = jnp.maximum(acc + b2_ref[...], 0.0)

        # ---- conv3 (1x1) + bn3 + identity shortcut + relu ------------------
        out = jnp.dot(acc.astype(w3_ref.dtype), w3_ref[...],
                      preferred_element_type=jnp.float32)        # [rows, W*Cout]
        # Residual re-read right before the add (not pinned across the body);
        # shortcut add + final ReLU run in f32.
        out = jnp.maximum(out + b3_ref[...] + x_ref[...], 0.0)
        o_ref[...] = out.astype(o_ref.dtype)            # lane-dense full store

    return kernel


# --------------------------- static weight packing --------------------------
def _kron_blockdiag(w, w_img):
    # [C_in, C_out] -> block-diagonal [W*C_in, W*C_out]
    return jnp.kron(jnp.eye(w_img, dtype=w.dtype), w)


def _conv2_packed_weight(w2_flat, w_img):
    # w2_flat: [9, C_mid, C_mid] with tap k = (dy+1)*3 + (dx+1)  (HWIO order).
    # Returns [3*W*C_mid, W*C_mid]: row blocks ordered dy = -1, 0, +1; inside
    # each dy block the dx taps sit on a block tri-diagonal (x_in = x_out + dx)
    # which also encodes the zero padding at the left/right image borders.
    blocks = []
    for dy in (-1, 0, 1):
        b = None
        for dx in (-1, 0, 1):
            k = (dy + 1) * 3 + (dx + 1)
            piece = jnp.kron(jnp.eye(w_img, k=-dx, dtype=w2_flat.dtype),
                             w2_flat[k])
            b = piece if b is None else b + piece
        blocks.append(b)
    return jnp.concatenate(blocks, axis=0)


# --------------------------- tiling heuristic --------------------------------
def _pick_rows_per_tile(n_img, h_img, cap_rows=1024):
    """rows_per_tile = whole images, multiple of 8 sublanes, <= cap_rows, and
    >= 2 grid tiles whenever the batch allows (megacore sharding on v7x)."""
    candidates = []
    for imgs in range(1, n_img + 1):
        if n_img % imgs:
            continue
        rpt = imgs * h_img
        if rpt % 8 or rpt > cap_rows:
            continue
        candidates.append(rpt)
    if not candidates:
        # TODO(synk): pad rows instead of falling back to one whole-problem
        # tile when H does not yield a multiple-of-8 whole-image tile.
        return n_img * h_img
    multi = [r for r in candidates if (n_img * h_img) // r >= 2]
    return max(multi) if multi else max(candidates)


# --------------------------- wrapper ----------------------------------------
def bottleneck_forward(x_nchw, w1, w2_flat, w3, s1, b1, s2, b2, s3, b3,
                       *, compute_dtype=jnp.float32):
    """x_nchw: [N, C_in, H, W] (PyTorch layout). Returns [N, C_out, H, W]."""
    n, c_in, h_img, w_img = x_nchw.shape
    c_mid = w1.shape[1]
    c_out = w3.shape[1]
    assert c_in == c_out, "identity shortcut requires C_in == C_out"

    # NCHW -> packed [N*H, W*C] layout (transpose only at the framework
    # boundary).  Activations stay f32 at the pallas_call boundary; any bf16
    # cast happens on the matmul operands inside the kernel.
    x2d = jnp.transpose(x_nchw, (0, 2, 3, 1)).reshape(n * h_img, w_img * c_in)
    x2d = x2d.astype(jnp.float32)

    # Folded BN scale/bias tiled over W.
    s1t, b1t = jnp.tile(s1, (1, w_img)), jnp.tile(b1, (1, w_img))   # [1, W*Cmid]
    s2t, b2t = jnp.tile(s2, (1, w_img)), jnp.tile(b2, (1, w_img))
    s3t, b3t = jnp.tile(s3, (1, w_img)), jnp.tile(b3, (1, w_img))   # [1, W*Cout]

    # Static weight packing with the BN scales folded into the output columns
    # (in f32, before the optional bf16 cast).  Biases stay f32 in-kernel.
    # TODO(synk): the kron(I_W, w) block-diagonal 1x1 weights are fine at toy
    # sizes but do not scale to production shapes; there conv1/conv3 should be
    # plain [N*H*W, C_in] x [C_in, C_mid] dots with unexpanded weights.
    w1p = (_kron_blockdiag(w1, w_img) * s1t).astype(compute_dtype)
    w2p = (_conv2_packed_weight(w2_flat, w_img) * s2t).astype(compute_dtype)
    w3p = (_kron_blockdiag(w3, w_img) * s3t).astype(compute_dtype)

    rows = n * h_img
    lane_in, lane_out = w_img * c_in, w_img * c_out

    rows_per_tile = _pick_rows_per_tile(n, h_img)
    assert rows % rows_per_tile == 0
    # The dy masking + roll wrap assume whole images per tile: assert it.
    assert rows_per_tile % h_img == 0, "tile must contain whole images"
    num_tiles = rows // rows_per_tile

    # Per-tile image-boundary masks for the dy = -1 / +1 taps (constants).
    row_in_img = jnp.arange(rows_per_tile, dtype=jnp.int32) % h_img
    up_mask = (row_in_img >= 1).astype(jnp.float32).reshape(-1, 1)
    down_mask = (row_in_img <= h_img - 2).astype(jnp.float32).reshape(-1, 1)

    def row_spec(lane):
        return pl.BlockSpec((rows_per_tile, lane), lambda i: (i, 0))

    def full_spec(shape):
        nd = len(shape)
        return pl.BlockSpec(shape, lambda i: (0,) * nd)

    operands = (x2d, w1p, w2p, w3p, b1t, b2t, b3t, up_mask, down_mask)
    in_specs = [row_spec(lane_in)] + [full_spec(op.shape) for op in operands[1:]]

    out2d = pl.pallas_call(
        make_bottleneck_kernel(),
        out_shape=jax.ShapeDtypeStruct((rows, lane_out), jnp.float32),
        grid=(num_tiles,),
        in_specs=in_specs,
        out_specs=row_spec(lane_out),
        compiler_params=pltpu.CompilerParams(
            dimension_semantics=("parallel",)),
    )(*operands)

    return out2d.reshape(n, h_img, w_img, c_out).transpose(0, 3, 1, 2)


# ---------------- reference (plain JAX, eval-mode BatchNorm) ----------------
def ref_forward(x_nhwc, w1_hwio, w2_hwio, w3_hwio, bn1, bn2, bn3):
    def conv(x, wt, padding):
        return lax.conv_general_dilated(
            x, wt, window_strides=(1, 1), padding=padding,
            dimension_numbers=('NHWC', 'HWIO', 'NHWC'))

    def bn(y, p):
        g, b, m, v = p
        return (y - m) / jnp.sqrt(v + EPS) * g + b

    out = jax.nn.relu(bn(conv(x_nhwc, w1_hwio, 'VALID'), bn1))
    out = jax.nn.relu(bn(conv(out, w2_hwio, [(1, 1), (1, 1)]), bn2))
    out = bn(conv(out, w3_hwio, 'VALID'), bn3)
    return jax.nn.relu(out + x_nhwc)


def make_bn_params(key, c):
    k1, k2, k3, k4 = jax.random.split(key, 4)
    gamma = 1.0 + 0.1 * jax.random.normal(k1, (c,), jnp.float32)
    beta = 0.1 * jax.random.normal(k2, (c,), jnp.float32)
    mean = 0.1 * jax.random.normal(k3, (c,), jnp.float32)
    var = jax.random.uniform(k4, (c,), jnp.float32, 0.5, 1.5)
    return gamma, beta, mean, var


def fold_bn(p):
    g, b, m, v = p
    scale = g / jnp.sqrt(v + EPS)
    bias = b - m * scale
    return scale.reshape(1, -1), bias.reshape(1, -1)


if __name__ == "__main__":
    key = jax.random.PRNGKey(0)
    kx, kw1, kw2, kw3, kb1, kb2, kb3 = jax.random.split(key, 7)

    x_nchw = jax.random.normal(kx, (N, C_IN, H, W), jnp.float32)

    # conv weights generated directly in matmul layout [in, out]; conv2 as
    # [9, in, out] with tap index k = kh*3 + kw (HWIO ordering).
    w1 = 0.2 * jax.random.normal(kw1, (C_IN, C_MID), jnp.float32)
    w2_flat = 0.2 * jax.random.normal(kw2, (9, C_MID, C_MID), jnp.float32)
    w3 = 0.2 * jax.random.normal(kw3, (C_MID, C_OUT), jnp.float32)

    bn1 = make_bn_params(kb1, C_MID)
    bn2 = make_bn_params(kb2, C_MID)
    bn3 = make_bn_params(kb3, C_OUT)
    s1, b1 = fold_bn(bn1)
    s2, b2 = fold_bn(bn2)
    s3, b3 = fold_bn(bn3)

    # f32 path (correctness check against the plain-JAX reference).
    out = bottleneck_forward(x_nchw, w1, w2_flat, w3, s1, b1, s2, b2, s3, b3)
    out = jax.block_until_ready(out)

    x_nhwc = jnp.transpose(x_nchw, (0, 2, 3, 1))
    w1_hwio = w1.reshape(1, 1, C_IN, C_MID)
    w2_hwio = w2_flat.reshape(3, 3, C_MID, C_MID)
    w3_hwio = w3.reshape(1, 1, C_MID, C_OUT)
    ref = ref_forward(x_nhwc, w1_hwio, w2_hwio, w3_hwio, bn1, bn2, bn3)
    ref_nchw = jnp.transpose(ref, (0, 3, 1, 2))

    assert out.shape == (N, C_OUT, H, W)
    max_err = float(jnp.max(jnp.abs(out - ref_nchw)))
    assert jnp.allclose(out, ref_nchw, rtol=1e-4, atol=1e-4), max_err

    # bf16 compute path (v6e/v7x): bf16 matmul operands, f32 accumulation and
    # f32 BN / residual / ReLU math (activations stay f32 at the boundary).
    # Loose tolerance check against the f32 reference.
    out_bf16 = bottleneck_forward(x_nchw, w1, w2_flat, w3, s1, b1, s2, b2,
                                  s3, b3, compute_dtype=jnp.bfloat16)
    out_bf16 = jax.block_until_ready(out_bf16)
    assert out_bf16.shape == (N, C_OUT, H, W)
    assert bool(jnp.isfinite(out_bf16).all())
    max_err_bf16 = float(jnp.max(jnp.abs(out_bf16 - ref_nchw)))
    assert max_err_bf16 < 0.5, max_err_bf16

    print("KERNEL_OK")
</pallas_src>

<mosaic_0001>
module attributes {stable_mosaic.version = 11 : i64} {
  func.func @kernel(%arg0: i32, %arg1: memref<8x128xf32, #tpu.memory_space<vmem>>, %arg2: memref<128x32xf32, #tpu.memory_space<vmem>>, %arg3: memref<96x32xf32, #tpu.memory_space<vmem>>, %arg4: memref<32x128xf32, #tpu.memory_space<vmem>>, %arg5: memref<1x32xf32, #tpu.memory_space<vmem>>, %arg6: memref<1x32xf32, #tpu.memory_space<vmem>>, %arg7: memref<1x128xf32, #tpu.memory_space<vmem>>, %arg8: memref<8x1xf32, #tpu.memory_space<vmem>>, %arg9: memref<8x1xf32, #tpu.memory_space<vmem>>, %arg10: memref<8x128xf32, #tpu.memory_space<vmem>>) attributes {dimension_semantics = [#tpu.dimension_semantics<parallel>], iteration_bounds = array<i64: 2>, scalar_prefetch = 0 : i64, scratch_operands = 0 : i64, tpu.core_type = #tpu.core_type<tc>, window_params = [{transform_indices = @transform_0, window_bounds = array<i64: 8, 128>}, {pipeline_mode = #tpu.pipeline_mode<synchronous>, transform_indices = @transform_1, window_bounds = array<i64: 128, 32>}, {pipeline_mode = #tpu.pipeline_mode<synchronous>, transform_indices = @transform_2, window_bounds = array<i64: 96, 32>}, {pipeline_mode = #tpu.pipeline_mode<synchronous>, transform_indices = @transform_3, window_bounds = array<i64: 32, 128>}, {pipeline_mode = #tpu.pipeline_mode<synchronous>, transform_indices = @transform_4, window_bounds = array<i64: 1, 32>}, {pipeline_mode = #tpu.pipeline_mode<synchronous>, transform_indices = @transform_5, window_bounds = array<i64: 1, 32>}, {pipeline_mode = #tpu.pipeline_mode<synchronous>, transform_indices = @transform_6, window_bounds = array<i64: 1, 128>}, {pipeline_mode = #tpu.pipeline_mode<synchronous>, transform_indices = @transform_7, window_bounds = array<i64: 8, 1>}, {pipeline_mode = #tpu.pipeline_mode<synchronous>, transform_indices = @transform_8, window_bounds = array<i64: 8, 1>}, {transform_indices = @transform_9, window_bounds = array<i64: 8, 128>}]} {
    %c0 = arith.constant 0 : index
    %c0_0 = arith.constant 0 : index
    %0 = vector.load %arg1[%c0, %c0_0] : memref<8x128xf32, #tpu.memory_space<vmem>>, vector<8x128xf32>
    %c0_1 = arith.constant 0 : index
    %c0_2 = arith.constant 0 : index
    %1 = vector.load %arg2[%c0_1, %c0_2] : memref<128x32xf32, #tpu.memory_space<vmem>>, vector<128x32xf32>
    %cst = arith.constant dense<0.000000e+00> : vector<8x32xf32>
    %2 = tpu.matmul %0, %1, %cst {dimension_numbers = #tpu.dot_dimension_numbers<[1], [0], [0], [1], [0, 0, 1, 1], [], []>} : vector<8x128xf32>, vector<128x32xf32>, vector<8x32xf32> -> vector<8x32xf32>
    %c0_3 = arith.constant 0 : index
    %c0_4 = arith.constant 0 : index
    %3 = vector.load %arg5[%c0_3, %c0_4] : memref<1x32xf32, #tpu.memory_space<vmem>>, vector<1x32xf32>
    %4 = vector.broadcast %3 : vector<1x32xf32> to vector<8x32xf32>
    %5 = arith.addf %2, %4 : vector<8x32xf32>
    %cst_5 = arith.constant 0.000000e+00 : f32
    %6 = vector.broadcast %cst_5 : f32 to vector<8x32xf32>
    %7 = arith.maximumf %5, %6 : vector<8x32xf32>
    %c0_6 = arith.constant 0 : index
    %c0_7 = arith.constant 0 : index
    %8 = vector.load %arg8[%c0_6, %c0_7] : memref<8x1xf32, #tpu.memory_space<vmem>>, vector<8x1xf32>
    %9 = vector.extract_strided_slice %7 {offsets = [7, 0], sizes = [1, 32], strides = [1, 1]} : vector<8x32xf32> to vector<1x32xf32>
    %10 = vector.extract_strided_slice %7 {offsets = [0, 0], sizes = [7, 32], strides = [1, 1]} : vector<8x32xf32> to vector<7x32xf32>
    %11 = tpu.concatenate %9, %10 in 0 : vector<1x32xf32>, vector<7x32xf32> -> vector<8x32xf32>
    %12 = vector.broadcast %8 : vector<8x1xf32> to vector<8x32xf32>
    %13 = arith.mulf %12, %11 : vector<8x32xf32>
    %c0_8 = arith.constant 0 : index
    %c0_9 = arith.constant 0 : index
    %14 = vector.load %arg9[%c0_8, %c0_9] : memref<8x1xf32, #tpu.memory_space<vmem>>, vector<8x1xf32>
    %15 = vector.extract_strided_slice %7 {offsets = [1, 0], sizes = [7, 32], strides = [1, 1]} : vector<8x32xf32> to vector<7x32xf32>
    %16 = vector.extract_strided_slice %7 {offsets = [0, 0], sizes = [1, 32], strides = [1, 1]} : vector<8x32xf32> to vector<1x32xf32>
    %17 = tpu.concatenate %15, %16 in 0 : vector<7x32xf32>, vector<1x32xf32> -> vector<8x32xf32>
    %18 = vector.broadcast %14 : vector<8x1xf32> to vector<8x32xf32>
    %19 = arith.mulf %18, %17 : vector<8x32xf32>
    %20 = tpu.concatenate %13, %7, %19 in 1 : vector<8x32xf32>, vector<8x32xf32>, vector<8x32xf32> -> vector<8x96xf32>
    %c0_10 = arith.constant 0 : index
    %c0_11 = arith.constant 0 : index
    %21 = vector.load %arg3[%c0_10, %c0_11] : memref<96x32xf32, #tpu.memory_space<vmem>>, vector<96x32xf32>
    %cst_12 = arith.constant dense<0.000000e+00> : vector<8x32xf32>
    %22 = tpu.matmul %20, %21, %cst_12 {dimension_numbers = #tpu.dot_dimension_numbers<[1], [0], [0], [1], [0, 0, 1, 1], [], []>} : vector<8x96xf32>, vector<96x32xf32>, vector<8x32xf32> -> vector<8x32xf32>
    %c0_13 = arith.constant 0 : index
    %c0_14 = arith.constant 0 : index
    %23 = vector.load %arg6[%c0_13, %c0_14] : memref<1x32xf32, #tpu.memory_space<vmem>>, vector<1x32xf32>
    %24 = vector.broadcast %23 : vector<1x32xf32> to vector<8x32xf32>
    %25 = arith.addf %22, %24 : vector<8x32xf32>
    %cst_15 = arith.constant 0.000000e+00 : f32
    %26 = vector.broadcast %cst_15 : f32 to vector<8x32xf32>
    %27 = arith.maximumf %25, %26 : vector<8x32xf32>
    %c0_16 = arith.constant 0 : index
    %c0_17 = arith.constant 0 : index
    %28 = vector.load %arg4[%c0_16, %c0_17] : memref<32x128xf32, #tpu.memory_space<vmem>>, vector<32x128xf32>
    %cst_18 = arith.constant dense<0.000000e+00> : vector<8x128xf32>
    %29 = tpu.matmul %27, %28, %cst_18 {dimension_numbers = #tpu.dot_dimension_numbers<[1], [0], [0], [1], [0, 0, 1, 1], [], []>} : vector<8x32xf32>, vector<32x128xf32>, vector<8x128xf32> -> vector<8x128xf32>
    %c0_19 = arith.constant 0 : index
    %c0_20 = arith.constant 0 : index
    %30 = vector.load %arg7[%c0_19, %c0_20] : memref<1x128xf32, #tpu.memory_space<vmem>>, vector<1x128xf32>
    %31 = vector.broadcast %30 : vector<1x128xf32> to vector<8x128xf32>
    %32 = arith.addf %29, %31 : vector<8x128xf32>
    %c0_21 = arith.constant 0 : index
    %c0_22 = arith.constant 0 : index
    %33 = vector.load %arg1[%c0_21, %c0_22] : memref<8x128xf32, #tpu.memory_space<vmem>>, vector<8x128xf32>
    %34 = arith.addf %32, %33 : vector<8x128xf32>
    %cst_23 = arith.constant 0.000000e+00 : f32
    %35 = vector.broadcast %cst_23 : f32 to vector<8x128xf32>
    %36 = arith.maximumf %34, %35 : vector<8x128xf32>
    %c0_24 = arith.constant 0 : index
    %c0_25 = arith.constant 0 : index
    %37 = vector.load %arg10[%c0_24, %c0_25] : memref<8x128xf32, #tpu.memory_space<vmem>>, vector<8x128xf32>
    tpu.vector_store %arg10[%c0_24, %c0_25], %36 {strides = array<i32>} : memref<8x128xf32, #tpu.memory_space<vmem>>, vector<8x128xf32>,
    return
  }
  func.func @transform_0(%arg0: i32) -> (i32, i32) {
    %c0_i32 = arith.constant 0 : i32
    %c0_i32_0 = arith.constant 0 : i32
    return %arg0, %c0_i32 : i32, i32
  }
  func.func @transform_1(%arg0: i32) -> (i32, i32) {
    %c0_i32 = arith.constant 0 : i32
    %c0_i32_0 = arith.constant 0 : i32
    %c0_i32_1 = arith.constant 0 : i32
    return %c0_i32, %c0_i32_0 : i32, i32
  }
  func.func @transform_2(%arg0: i32) -> (i32, i32) {
    %c0_i32 = arith.constant 0 : i32
    %c0_i32_0 = arith.constant 0 : i32
    %c0_i32_1 = arith.constant 0 : i32
    return %c0_i32, %c0_i32_0 : i32, i32
  }
  func.func @transform_3(%arg0: i32) -> (i32, i32) {
    %c0_i32 = arith.constant 0 : i32
    %c0_i32_0 = arith.constant 0 : i32
    %c0_i32_1 = arith.constant 0 : i32
    return %c0_i32, %c0_i32_0 : i32, i32
  }
  func.func @transform_4(%arg0: i32) -> (i32, i32) {
    %c0_i32 = arith.constant 0 : i32
    %c0_i32_0 = arith.constant 0 : i32
    %c0_i32_1 = arith.constant 0 : i32
    return %c0_i32, %c0_i32_0 : i32, i32
  }
  func.func @transform_5(%arg0: i32) -> (i32, i32) {
    %c0_i32 = arith.constant 0 : i32
    %c0_i32_0 = arith.constant 0 : i32
    %c0_i32_1 = arith.constant 0 : i32
    return %c0_i32, %c0_i32_0 : i32, i32
  }
  func.func @transform_6(%arg0: i32) -> (i32, i32) {
    %c0_i32 = arith.constant 0 : i32
    %c0_i32_0 = arith.constant 0 : i32
    %c0_i32_1 = arith.constant 0 : i32
    return %c0_i32, %c0_i32_0 : i32, i32
  }
  func.func @transform_7(%arg0: i32) -> (i32, i32) {
    %c0_i32 = arith.constant 0 : i32
    %c0_i32_0 = arith.constant 0 : i32
    %c0_i32_1 = arith.constant 0 : i32
    return %c0_i32, %c0_i32_0 : i32, i32
  }
  func.func @transform_8(%arg0: i32) -> (i32, i32) {
    %c0_i32 = arith.constant 0 : i32
    %c0_i32_0 = arith.constant 0 : i32
    %c0_i32_1 = arith.constant 0 : i32
    return %c0_i32, %c0_i32_0 : i32, i32
  }
  func.func @transform_9(%arg0: i32) -> (i32, i32) {
    %c0_i32 = arith.constant 0 : i32
    %c0_i32_0 = arith.constant 0 : i32
    return %arg0, %c0_i32 : i32, i32
  }
}

</mosaic_0001>

<bundles_post_ra>
// kernel: tpu_custom_call.1
= control target key start
LH: loop header
LB: loop body
LE: loop exit
PB: predicated region body
PF: predicated region fallthrough
CT: control target
= control target key end

     0   :  { %s931_s0 = inlined_call_operand.vmem [shape: f32[16,128], index: 0, kind: input, shape index: {}]   ;;  %s932_s1 = inlined_call_operand.vmem [shape: f32[128,32], index: 1, kind: input, shape index: {}]   ;;  %s933_s2 = inlined_call_operand.vmem [shape: f32[96,32], index: 2, kind: input, shape index: {}]   ;;  %s934_s3 = inlined_call_operand.vmem [shape: f32[32,128], index: 3, kind: input, shape index: {}]   ;;  %s935_s4 = inlined_call_operand.vmem [shape: f32[1,32], index: 4, kind: input, shape index: {}]   ;;  %s936_s5 = inlined_call_operand.vmem [shape: f32[1,32], index: 5, kind: input, shape index: {}]   ;;  %s937_s6 = inlined_call_operand.vmem [shape: f32[1,128], index: 6, kind: input, shape index: {}]   ;;  %s938_s7 = inlined_call_operand.vmem [shape: f32[8,1], index: 7, kind: input, shape index: {}]   ;;  %s939_s8 = inlined_call_operand.vmem [shape: f32[8,1], index: 8, kind: input, shape index: {}]   ;;  %s940_s9 = inlined_call_operand.hbm [shape: f32[16,128], index: 9, kind: output, shape index: {}]  }
   0x1   :  { %941 = sst [smem:[#allocation5_spill]] %s938_s7 }
   0x2   :  { %14 = vsyncpa [#allocation3], 0 }
   0x3   :  { %16 = vsyncpa [#allocation3 + $0x1], 0  ;;  %s729_s30 = smov 0   ;;  %s731_s10 = smov 0  }
   0x4   :  { %s733_s11 = smov 0   ;;  %s735_s12 = smov 0  }
   0x5 LB: > { %s750_s13 = sadd.s32 4294967295, %s674_s12   ;;  %s554_s14 = sadd.s32 4294967294, %s674_s12   ;;  %s674_s12 = sphi %s735_s12, %s948_s12   ;;  %s670_s11 = sphi %s733_s11, %s947_s11   ;;  %s666_s10 = sphi %s731_s10, %s946_s10   ;;  %s662_s30 = sphi %s729_s30, %s945_s30  }
   0x6   : > { %s754_s15 = sadd.s32 1, %s674_s12   ;;  %s223_s16 = sadd.s32 1, %s670_s11 }
   0x7   : > { %s220_s17 = ssub.s32 %s674_s12, %s754_s15  ;;  %p233_p0 = scmp.ne.s32.totalorder %s670_s11, %s666_s10 }
   0x8   : > { %p221_p1 = scmp.eq.s32.totalorder %s220_s17, 0  ;;  %p234_p2 = scmp.eq.s32.totalorder %s750_s13, 1 }
   0x9   : > { %p239_p3 = scmp.ne.s32.totalorder %s666_s10, %s662_s30  ;;  %p240_p4 = scmp.eq.s32.totalorder %s554_s14, 1 }
   0xa   : > { %s765_s18 = scalar_select %p221_p1, %s670_s11, %s223_s16  }
   0xb   : > { %p767_p5 = por %p234_p2, %p233_p0  ;;  %p771_p6 = por %p240_p4, %p239_p3 }
   0xc   : > { %p557_p7 = scmp.ge.s32.totalorder %s674_s12, 1  ;;  %p289_p8 = scmp.lt.s32.totalorder %s674_s12, 3 }
   0xe   : > { %p290_p9 = pnand %p557_p7, %p289_p8 }
   0xf   : > { %s944_s7 = sld [smem:[#allocation5_spill]] (!%p290_p9)  ;;  %p324_p10 = scmp.lt.s32.totalorder (!%p290_p9), %s750_s13, 1 }
  0x10   : > { %293 = sbr.rel (%p290_p9) target bundleno = 578 (0x242), region = 56  ;;  %s677_s29 = smov (!%p290_p9), 32  }
  0x11   : > { %s321_s25 = sand.u32 (!%p290_p9), 1, %s666_s10   ;;  %s563_s26 = sshll.u32 (!%p290_p9), %s750_s13, 3 }
  0x15   : > { %v344_v0 = vld [vmem:[%s932_s1 + $0x78] sm:$0xff]  ;;  %v343_v1 = vld [vmem:[%s932_s1 + $0x70] sm:$0xff]  ;;  %v676_v2 = vmov 0   ;;  %v342_v3 = vld [vmem:[%s932_s1 + $0x68] sm:$0xff]  ;;  %s325_s23 = scalar_select %p324_p10, %s750_s13, 1  ;;  %vm400_vm0 = vcmask 261120  }
  0x16   : > { %349 = vmatpush.msra.mxu0 %v344_v0  ;;  %608 = vset.pattern.permute.xlu0 %v676_v2  ;;  %v341_v4 = vld [vmem:[%s932_s1 + $0x60] sm:$0xff]  ;;  %v340_v6 = vld [vmem:[%s932_s1 + $0x58] sm:$0xff]  ;;  %v339_v7 = vld [vmem:[%s932_s1 + $0x50] sm:$0xff]  ;;  %vm402_vm1 = vcmask 523264   ;;  %vm420_vm2 = vcmask 785408   ;;  %s480_s13 = scalar_lea.sflag [#allocation3], %s321_s25 }
  0x17   : > { %v382_v5 = vld [vmem:[%s939_s8] sm:$0xff]  ;;  %v338_v8 = vld [vmem:[%s932_s1 + $0x48] sm:$0xff]  ;;  %v336_v11 = vld [vmem:[%s932_s1 + $0x38] sm:$0xff]  ;;  %s559_s28 = sshll.u32 %s325_s23, 3  ;;  %s558_s23 = sshll.u32 %s321_s25, 3 }
  0x18   : > { %350 = vmatpush.msra.mxu0 %v343_v1  ;;  %389 = vperm.xlu0 %608, %v382_v5   ;;  %v370_v9 = vld [vmem:[%s944_s7] sm:$0xff]  ;;  %v335_v12 = vld [vmem:[%s932_s1 + $0x30] sm:$0xff]  ;;  %v334_v13 = vld [vmem:[%s932_s1 + $0x28] sm:$0xff]  ;;  %s327_s24 = scalar_lea.vmem %s931_s0, %s559_s28  ;;  %s678_s28 = smov 64  }
  0x19   : > { %v337_v10 = vld [vmem:[%s932_s1 + $0x40] sm:$0xff]  ;;  %v332_v15 = vld [vmem:[%s932_s1 + $0x18] sm:$0xff]  ;;  %v331_v16 = vld [vmem:[%s932_s1 + $0x10] sm:$0xff]  ;;  %s490_s7 = scalar_lea.hbm %s940_s9, %s563_s26  ;;  %s323_s16 = scalar_lea.vmem [#allocation2], %s558_s23 }
  0x1a   : > { %351 = vmatpush.msra.mxu0 %v342_v3  ;;  %v333_v14 = vld [vmem:[%s932_s1 + $0x20] sm:$0xff]  ;;  %v330_v17 = vld [vmem:[%s932_s1 + $0x8] sm:$0xff]  ;;  %v415_v20 = vld [vmem:[%s933_s2 + $0x58] sm:$0xff]  ;;  %s492_s17 = sshll.u32 %s323_s16, 4  ;;  %s494_s21 = sshll.u32 %s490_s7, 4  ;;  %s493_s17 = int_to_ptr.vmem [resolvable:$true] %s492_s17  ;;  %s495_s21 = int_to_ptr.hbm [resolvable:$true] %s494_s21 }
  0x1b   : > { %v329_v18 = vld [vmem:[%s932_s1] sm:$0xff]  ;;  %v414_v21 = vld [vmem:[%s933_s2 + $0x50] sm:$0xff]  ;;  %428 = vmatpush.msra.mxu1 %v415_v20  ;;  %v413_v22 = vld [vmem:[%s933_s2 + $0x48] sm:$0xff]  ;;  %s626_s22 = sshra.s32 %s495_s21, 4  ;;  %s632_s23 = scalar_lea.hbm %s940_s9, 16  ;;  %s627_s22 = int_to_ptr.hbm [resolvable:$true] %s626_s22 }
  0x1c   : > { %352 = vmatpush.msra.mxu0 %v341_v4  ;;  %v836_v19 = vld [vmem:[%s327_s24] sm:$0xff]  ;;  %v411_v24 = vld [vmem:[%s933_s2 + $0x38] sm:$0xff]  ;;  %v410_v25 = vld [vmem:[%s933_s2 + $0x30] sm:$0xff]  ;;  %s628_s24 = scalar_lea.hbm %s627_s22, 8  ;;  %p633_p0 = scmp.lt.s32.totalorder %s627_s22, %s940_s9 }
  0x1d   : > { %429 = vmatpush.msra.mxu1 %v414_v21  ;;  %v412_v23 = vld [vmem:[%s933_s2 + $0x40] sm:$0xff]  ;;  %v409_v26 = vld [vmem:[%s933_s2 + $0x28] sm:$0xff]  ;;  %v407_v35 = vld [vmem:[%s933_s2 + $0x18] sm:$0xff]  ;;  %p629_p11 = scmp.ne.s32.totalorder %s627_s22, %s628_s24  ;;  %p634_p1 = scmp.lt.s32.totalorder %s632_s23, %s628_s24 }
  0x1e   : > { %353 = vmatpush.msra.mxu0 %v340_v6  ;;  %v609_v27 = vld [vmem:[%s935_s4] ss:$0 sm:$0xff]  ;;  %v406_v36 = vld [vmem:[%s933_s2 + $0x10] sm:$0xff]  ;;  %v405_v37 = vld [vmem:[%s933_s2 + $0x8] sm:$0xff] }
  0x1f   : > { %430 = vmatpush.msra.mxu1 %v413_v22  ;;  %v408_v34 = vld [vmem:[%s933_s2 + $0x20] sm:$0xff]  ;;  %v448_v39 = vld [vmem:[%s934_s3 + $0x18] sm:$0xff]  ;;  %v447_v47 = vld [vmem:[%s934_s3 + $0x10] sm:$0xff]  ;;  %p630_p12 = pnand %p629_p11, %p767_p5  ;;  %p635_p2 = por %p634_p1, %p633_p0 }
  0x20   : > { %354 = vmatpush.msra.mxu0 %v339_v7  ;;  %378 = vperm.xlu0 %608, %v370_v9   ;;  %v404_v38 = vld [vmem:[%s933_s2] sm:$0xff]  ;;  %v446_v48 = vld [vmem:[%s934_s3 + $0x8] sm:$0xff] }
  0x21   : > { %431 = vmatpush.msra.mxu1 %v412_v23  ;;  %468 = vmatpush.msra.mxu2 %v448_v39  ;;  %v445_v49 = vld [vmem:[%s934_s3] sm:$0xff]  ;;  %p631_p13 = pneg %p630_p12 }
  0x22   : > { %355 = vmatpush.msra.mxu0 %v338_v8  ;;  %v610_v50 = vld [vmem:[%s936_s5] ss:$0 sm:$0xff] }
  0x23   : > { %432 = vmatpush.msra.mxu1 %v411_v24  ;;  %469 = vmatpush.msra.mxu2 %v447_v47  ;;  %v611_v54 = vld [vmem:[%s937_s6] ss:$0 sm:$0xff]  ;;  %p636_p3 = pnand %p635_p2, %p631_p13 }
  0x24   : > { %356 = vmatpush.msra.mxu0 %v337_v10 }
  0x25   : > { %433 = vmatpush.msra.mxu1 %v410_v25  ;;  %470 = vmatpush.msra.mxu2 %v446_v48 }
  0x26   : > { %357 = vmatpush.msra.mxu0 %v336_v11 }
  0x27   : > { %434 = vmatpush.msra.mxu1 %v409_v26  ;;  %471 = vmatpush.msra.mxu2 %v445_v49 }
  0x28   : > { %358 = vmatpush.msra.mxu0 %v335_v12 }
  0x29   : > { %435 = vmatpush.msra.mxu1 %v408_v34 }
  0x2a   : > { %359 = vmatpush.msra.mxu0 %v334_v13 }
  0x2b   : > { %436 = vmatpush.msra.mxu1 %v407_v35 }
  0x2c   : > { %360 = vmatpush.msra.mxu0 %v333_v14 }
  0x2d   : > { %437 = vmatpush.msra.mxu1 %v406_v36 }
  0x2e   : > { %361 = vmatpush.msra.mxu0 %v332_v15 }
  0x2f   : > { %438 = vmatpush.msra.mxu1 %v405_v37 }
  0x30   : > { %362 = vmatpush.msra.mxu0 %v331_v16 }
  0x31   : > { %439 = vmatpush.msra.mxu1 %v404_v38 }
  0x32   : > { %363 = vmatpush.msra.mxu0 %v330_v17 }
  0x34   : > { %364 = vmatpush.msra.mxu0 %v329_v18 }
  0x35   : > { %365 = vmatmul.f32.vlgmr.msra.gmra.mxu0 %v836_v19 }
  0x8a   : > { %v390_v32 = vpop.permute.xlu0 %389 }
  0x92   : > { %v379_v42 = vpop.permute.xlu0 %378 }
  0xb2   : > { %v366_v28 = vpop.f32.mrf.mxu0 }
  0xb3   : > { %v367_v29 = vadd.f32 %v609_v27, %v366_v28 }
  0xb5   : > { %v369_v30 = vmax.f32 %v367_v29, 0.0 }
  0xb7   : > { %393 = vrot.lane.b32.xlu1 %v369_v30, %s677_s29  ;;  %v383_v31 = vrot.slane %v369_v30, 1  ;;  %v372_v41 = vrot.slane %v369_v30, 7 }
  0xb9   : > { %v392_v33 = vmul.f32 %v390_v32, %v383_v31  ;;  %v381_v43 = vmul.f32 %v379_v42, %v372_v41 }
  0xbf   : > { %397 = vrot.lane.b32.xlu1 %v392_v33, %s678_s28 }
 0x129   : > { %v394_v40 = vpop.permute.xlu1 %393 }
 0x12a   : > { %v401_v44 = vsel %vm400_vm0, %v381_v43, %v394_v40 }
 0x131   : > { %v398_v45 = vpop.permute.xlu1 %397 }
 0x132   : > { %v403_v46 = vsel %vm402_vm1, %v401_v44, %v398_v45 }
 0x133   : > { %560 = vmatmul.msk.f32.vlgmr.msra.gmra.mxu1 %vm420_vm2, %v403_v46 }
 0x1b0   : > { %v441_v51 = vpop.f32.mrf.mxu1 }
 0x1b1   : > { %v442_v52 = vadd.f32 %v610_v50, %v441_v51 }
 0x1b3   : > { %v444_v53 = vmax.f32 %v442_v52, 0.0 }
 0x1b5   : > { %561 = vmatmul.msk.f32.vlgmr.msra.gmra.mxu2 %vm400_vm0, %v444_v53 }
 0x238   : > { %v473_v55 = vpop.f32.mrf.mxu2 }
 0x239   : > { %v474_v56 = vadd.f32 %v611_v54, %v473_v55 }
 0x23b   : > { %v476_v57 = vadd.f32 %v474_v56, %v836_v19 }
 0x23d   : > { %v477_v58 = vmax.f32 %v476_v57, 0.0 }
 0x23f   : > { %478 = vst [vmem:[%s323_s16] sm:$0xff] %v477_v58 }
 0x240   : > { %639 = shalt.err (!%p636_p3)
}
 0x241   : > { %566 = dma.vmem_to_hbm [thread:$0]  (%p767_p5), %s493_s17, 128, %s495_s21, %s480_s13  }
 0x242 PF: > { %p572_p4 = scmp.ge.s32.totalorder %s674_s12, 2  ;;  %s506_s25 = sand.u32 1, %s662_s30  }
 0x243   : > { %s507_s14 = scalar_lea.sflag [#allocation3], %s506_s25 }
 0x244   : > { %p569_p7 = pnand %p572_p4, %p771_p6 }
 0x246   : > { %p570_p8 = pneg %p569_p7 }
 0x248   : > { %657 = dma.done.wait (%p570_p8), %s507_s14, 128  }
 0x249   : > { %659 = vsyncadd (%p570_p8), %s507_s14, 4294967168  ;;  %p19_p9 = scmp.ge.s32.totalorder %s754_s15, 4   ;;  %s945_s30 = smov %s666_s10 }
 0x24a   : > { %s946_s10 = smov %s670_s11  ;;  %s947_s11 = smov %s765_s18 }
 0x24b   : > { %s948_s12 = smov %s754_s15  ;;  %21 = sbr.rel (!%p19_p9) target bundleno = 5 (0x5), region = 91 }
 0x250   :  { %513 = vsyncpa [#allocation3], 1 }
 0x251   :  { %515 = vsyncpa [#allocation3 + $0x1], 1 }

</bundles_post_ra>
